<compile_context>
chip_gen: v7x
topology: tpu7x:2x2x1
jax: 0.10.0
libtpu: 0.0.40
codegen_flags: <defaults>
</compile_context>

<pallas_src>
import functools

import jax
import jax.numpy as jnp
from jax.experimental import pallas as pl
from jax.experimental.pallas import tpu as pltpu


# ----------------------------- small helpers ---------------------------------
def _round_up(n, m):
    return ((n + m - 1) // m) * m


def _largest_divisor_leq(n, cap):
    for d in range(min(n, cap), 0, -1):
        if n % d == 0:
            return d
    return 1


def _pick_tile(n, cap, quantum):
    """Tile of n that is <= cap and either == n or a multiple of `quantum`."""
    if n <= cap:
        return n
    for d in range(cap - (cap % quantum), 0, -quantum):
        if n % d == 0:
            return d
    return n


# ------------------- hoisted input projection: X @ W_ih^T + b -----------------
def _matmul_bias_kernel(x_ref, w_ref, b_ref, o_ref):
    o_ref[...] = (jnp.dot(x_ref[...], w_ref[...],
                          preferred_element_type=jnp.float32)
                  + b_ref[...]).astype(o_ref.dtype)


def matmul_bias(x2d, w_t, bias, *, tm_cap=256, tn_cap=512):
    """(M, K)bf16 @ (K, N)bf16 + (1, N)f32 -> (M, N)f32, tiled over M and N."""
    M, K = x2d.shape
    N = w_t.shape[1]
    tm = min(tm_cap, _round_up(M, 8))
    Mp = _round_up(M, tm)
    tn = _pick_tile(N, tn_cap, 128)
    xp = jnp.pad(x2d, ((0, Mp - M), (0, 0))) if Mp != M else x2d
    out = pl.pallas_call(
        _matmul_bias_kernel,
        out_shape=jax.ShapeDtypeStruct((Mp, N), jnp.float32),
        grid=(Mp // tm, N // tn),
        in_specs=[
            pl.BlockSpec((tm, K), lambda i, j: (i, 0)),
            pl.BlockSpec((K, tn), lambda i, j: (0, j)),
            pl.BlockSpec((1, tn), lambda i, j: (0, j)),
        ],
        out_specs=pl.BlockSpec((tm, tn), lambda i, j: (i, j)),
        compiler_params=pltpu.CompilerParams(
            dimension_semantics=("parallel", "parallel"),
            vmem_limit_bytes=64 * 1024 * 1024),
    )(xp, w_t, bias)
    return out[:M] if Mp != M else out


# ----------------------------- LSTM recurrence kernel -------------------------
def _lstm_rec_kernel(g_ref, whh_ref, out_ref, h_sc, c_sc, *, tt):
    """One grid step = one batch block x Tt timesteps.

    g_ref:   (Tt, Bb, 4H) f32  -- precomputed x@W_ih^T + b
    whh_ref: (H, 4H)      bf16 -- loop-invariant, VMEM resident
    out_ref: (Tt, Bb, H)  f32
    h_sc/c_sc: (Bb, H) f32 scratch carrying state across time blocks.
    """
    @pl.when(pl.program_id(1) == 0)          # time-block axis is the inner axis
    def _():
        h_sc[...] = jnp.zeros_like(h_sc)
        c_sc[...] = jnp.zeros_like(c_sc)

    H = h_sc.shape[1]
    whh = whh_ref[...]

    def step(t, carry):
        h, c = carry
        gates = g_ref[t] + jnp.dot(h.astype(whh.dtype), whh,
                                   preferred_element_type=jnp.float32)
        i = jax.nn.sigmoid(gates[:, 0 * H:1 * H])
        f = jax.nn.sigmoid(gates[:, 1 * H:2 * H])
        g = jnp.tanh(gates[:, 2 * H:3 * H])
        o = jax.nn.sigmoid(gates[:, 3 * H:4 * H])
        c = f * c + i * g
        h = o * jnp.tanh(c)
        out_ref[t] = h.astype(out_ref.dtype)
        return (h, c)

    h_last, c_last = jax.lax.fori_loop(0, tt, step,
                                       (h_sc[...], c_sc[...]), unroll=True)
    h_sc[...] = h_last
    c_sc[...] = c_last


def lstm_recurrence(gates, w_hh_t):
    """gates: (T, Bp, 4H) f32, w_hh_t: (H, 4H) bf16 -> (T, Bp, H) f32."""
    T, Bp, G4 = gates.shape
    H = w_hh_t.shape[0]
    tt = _largest_divisor_leq(T, 16)          # timesteps per grid step
    bb = _pick_tile(Bp, 256, 8)               # batch rows per grid step
    return pl.pallas_call(
        functools.partial(_lstm_rec_kernel, tt=tt),
        out_shape=jax.ShapeDtypeStruct((T, Bp, H), jnp.float32),
        grid_spec=pltpu.PrefetchScalarGridSpec(
            num_scalar_prefetch=0,
            grid=(Bp // bb, T // tt),
            in_specs=[
                pl.BlockSpec((tt, bb, G4), lambda b, t: (t, b, 0)),
                pl.BlockSpec((H, G4), lambda b, t: (0, 0)),
            ],
            out_specs=pl.BlockSpec((tt, bb, H), lambda b, t: (t, b, 0)),
            scratch_shapes=[pltpu.VMEM((bb, H), jnp.float32),   # h
                            pltpu.VMEM((bb, H), jnp.float32)],  # c
        ),
        compiler_params=pltpu.CompilerParams(
            dimension_semantics=("parallel", "arbitrary"),      # batch || time
            vmem_limit_bytes=64 * 1024 * 1024),
    )(gates, w_hh_t)


# ----------------------------- fused MLP head ----------------------------------
def _mlp_head_kernel(x_ref, *refs, n_layers):
    out_ref = refs[-1]
    h = x_ref[...]
    for l in range(n_layers):
        w = refs[2 * l][...]
        b = refs[2 * l + 1][...]
        h = jnp.dot(h.astype(w.dtype), w,
                    preferred_element_type=jnp.float32) + b
        if l < n_layers - 1:
            h = jnp.maximum(h, 0.0)            # ReLU on all but last layer
    out_ref[...] = h.astype(out_ref.dtype)


def mlp_head(x2d, fc_params, *, tm_cap=256):
    """All FC layers in one kernel; feature dims zero-padded to 128 multiples."""
    M, K = x2d.shape
    n_layers = len(fc_params)
    Kp = _round_up(K, 128)
    tm = min(tm_cap, _round_up(M, 8))
    Mp = _round_up(M, tm)
    xp = (jnp.pad(x2d, ((0, Mp - M), (0, Kp - K)))
          if (Mp != M or Kp != K) else x2d)

    args = [xp]
    in_specs = [pl.BlockSpec((tm, Kp), lambda i: (i, 0))]
    prev = Kp
    for (w, b) in fc_params:
        fin, fout = w.shape
        fp = _round_up(fout, 128)
        args.append(jnp.pad(w, ((0, prev - fin), (0, fp - fout))))
        args.append(jnp.pad(b, ((0, 0), (0, fp - fout))))
        in_specs.append(pl.BlockSpec((prev, fp), lambda i: (0, 0)))
        in_specs.append(pl.BlockSpec((1, fp), lambda i: (0, 0)))
        prev = fp
    F = prev

    out = pl.pallas_call(
        functools.partial(_mlp_head_kernel, n_layers=n_layers),
        out_shape=jax.ShapeDtypeStruct((Mp, F), jnp.float32),
        grid=(Mp // tm,),
        in_specs=in_specs,
        out_specs=pl.BlockSpec((tm, F), lambda i: (i, 0)),
        compiler_params=pltpu.CompilerParams(
            dimension_semantics=("parallel",),
            vmem_limit_bytes=64 * 1024 * 1024),
    )(*args)
    return out[:M]


# ----------------------------- Parameter init ----------------------------------
def init_params(key, dim_X, dim_y, lstm_dims, fc_dims, w_dtype=jnp.bfloat16):
    n_lstm = [dim_X] + list(lstm_dims)
    n_fc = [lstm_dims[-1]] + list(fc_dims) + [dim_y]
    params = {"lstm": [], "fc": []}
    for i in range(len(lstm_dims)):
        Din, H = n_lstm[i], n_lstm[i + 1]
        k = 1.0 / float(H) ** 0.5
        key, k0, k1, k2, k3 = jax.random.split(key, 5)
        w_ih = jax.random.uniform(k0, (4 * H, Din), jnp.float32, -k, k)
        w_hh = jax.random.uniform(k1, (4 * H, H), jnp.float32, -k, k)
        b_ih = jax.random.uniform(k2, (4 * H,), jnp.float32, -k, k)
        b_hh = jax.random.uniform(k3, (4 * H,), jnp.float32, -k, k)
        params["lstm"].append((w_ih.T.astype(w_dtype),       # (Din, 4H) bf16
                               w_hh.T.astype(w_dtype),       # (H,   4H) bf16
                               (b_ih + b_hh)[None, :]))      # (1,   4H) f32
    for i in range(len(n_fc) - 1):
        fin, fout = n_fc[i], n_fc[i + 1]
        k = 1.0 / float(fin) ** 0.5
        key, k0, k1 = jax.random.split(key, 3)
        w = jax.random.uniform(k0, (fout, fin), jnp.float32, -k, k)
        b = jax.random.uniform(k1, (fout,), jnp.float32, -k, k)
        params["fc"].append((w.T.astype(w_dtype), b[None, :]))
    return params


# ----------------------------- Forward (Pallas) ---------------------------------
def lstm_forward(params, X):
    T, B, _ = X.shape
    Bp = _round_up(B, 8)                      # sublane-aligned effective batch
    feat = X.astype(jnp.float32)
    if Bp != B:
        feat = jnp.pad(feat, ((0, 0), (0, Bp - B), (0, 0)))

    for (w_ih_t, w_hh_t, bias) in params["lstm"]:
        H = w_hh_t.shape[0]
        # 1) hoisted input projection: one big MXU-shaped matmul over T*Bp rows.
        x2d = feat.reshape(T * Bp, feat.shape[-1]).astype(jnp.bfloat16)
        g = matmul_bias(x2d, w_ih_t, bias).reshape(T, Bp, 4 * H)
        # 2) serial recurrence: only h @ W_hh^T remains in the time loop.
        feat = lstm_recurrence(g, w_hh_t)

    # fused FC head on (T*Bp, H) rows, features padded to 128 inside.
    out2d = mlp_head(feat.reshape(T * Bp, feat.shape[-1]), params["fc"])
    dim_y = params["fc"][-1][0].shape[1]
    out = out2d.reshape(T, Bp, -1)[:, :B, :dim_y]
    return jnp.squeeze(out)                   # matches feat.squeeze_()


# ----------------------------- Pure-JAX reference -------------------------------
def lstm_forward_ref(params, X):
    feat = X.astype(jnp.float32)
    for (w_ih_t, w_hh_t, bias) in params["lstm"]:
        H = w_hh_t.shape[0]
        B = feat.shape[1]
        g_all = jnp.dot(feat.astype(w_ih_t.dtype), w_ih_t,
                        preferred_element_type=jnp.float32) + bias[0]

        def step(carry, g_t):
            h, c = carry
            gates = g_t + jnp.dot(h.astype(w_hh_t.dtype), w_hh_t,
                                  preferred_element_type=jnp.float32)
            i = jax.nn.sigmoid(gates[:, :H])
            f = jax.nn.sigmoid(gates[:, H:2 * H])
            g = jnp.tanh(gates[:, 2 * H:3 * H])
            o = jax.nn.sigmoid(gates[:, 3 * H:])
            c = f * c + i * g
            h = o * jnp.tanh(c)
            return (h, c), h

        init = (jnp.zeros((B, H), jnp.float32), jnp.zeros((B, H), jnp.float32))
        _, feat = jax.lax.scan(step, init, g_all)

    n_fc = len(params["fc"])
    for idx, (w_t, b) in enumerate(params["fc"]):
        feat = jnp.dot(feat.astype(w_t.dtype), w_t,
                       preferred_element_type=jnp.float32) + b[0]
        if idx < n_fc - 1:
            feat = jnp.maximum(feat, 0.0)
    return jnp.squeeze(feat)


# ----------------------------- Main ----------------------------------------------
if __name__ == "__main__":
    seq_len, batch = 8, 2
    dim_X, dim_y = 16, 8
    lstm_dims = (128,)       # scaled-down analogue of lstm=(1024,)
    fc_dims = (64,)          # scaled-down analogue of fc=(256,)

    key = jax.random.PRNGKey(0)
    pkey, xkey = jax.random.split(key)
    params = init_params(pkey, dim_X, dim_y, lstm_dims, fc_dims)
    X = jax.random.normal(xkey, (seq_len, batch, dim_X), jnp.float32)

    out = jax.block_until_ready(lstm_forward(params, X))
    ref = jax.block_until_ready(lstm_forward_ref(params, X))

    assert out.shape == (seq_len, batch, dim_y), out.shape
    # bf16 matmul operands (f32 accumulation) in both paths -> loose-ish tol.
    assert jnp.allclose(out, ref, atol=5e-3, rtol=5e-3), \
        float(jnp.max(jnp.abs(out - ref)))
    print("KERNEL_OK")
</pallas_src>

<mosaic_0001>
module attributes {stable_mosaic.version = 11 : i64} {
  func.func @_matmul_bias_kernel(%arg0: i32, %arg1: i32, %arg2: memref<64x16xbf16, #tpu.memory_space<vmem>>, %arg3: memref<16x512xbf16, #tpu.memory_space<vmem>>, %arg4: memref<1x512xf32, #tpu.memory_space<vmem>>, %arg5: memref<64x512xf32, #tpu.memory_space<vmem>>) attributes {dimension_semantics = [#tpu.dimension_semantics<parallel>, #tpu.dimension_semantics<parallel>], iteration_bounds = array<i64: 1, 1>, scalar_prefetch = 0 : i64, scratch_operands = 0 : i64, tpu.core_type = #tpu.core_type<tc>, window_params = [{transform_indices = @transform_0, window_bounds = array<i64: 64, 16>}, {transform_indices = @transform_1, window_bounds = array<i64: 16, 512>}, {transform_indices = @transform_2, window_bounds = array<i64: 1, 512>}, {transform_indices = @transform_3, window_bounds = array<i64: 64, 512>}]} {
    %c0 = arith.constant 0 : index
    %c0_0 = arith.constant 0 : index
    %0 = vector.load %arg2[%c0, %c0_0] : memref<64x16xbf16, #tpu.memory_space<vmem>>, vector<64x16xbf16>
    %c0_1 = arith.constant 0 : index
    %c0_2 = arith.constant 0 : index
    %1 = vector.load %arg3[%c0_1, %c0_2] : memref<16x512xbf16, #tpu.memory_space<vmem>>, vector<16x512xbf16>
    %cst = arith.constant dense<0.000000e+00> : vector<64x512xf32>
    %2 = tpu.matmul %0, %1, %cst {dimension_numbers = #tpu.dot_dimension_numbers<[1], [0], [0], [1], [0, 0, 1, 1], [], []>} : vector<64x16xbf16>, vector<16x512xbf16>, vector<64x512xf32> -> vector<64x512xf32>
    %c0_3 = arith.constant 0 : index
    %c0_4 = arith.constant 0 : index
    %3 = vector.load %arg4[%c0_3, %c0_4] : memref<1x512xf32, #tpu.memory_space<vmem>>, vector<1x512xf32>
    %4 = vector.broadcast %3 : vector<1x512xf32> to vector<64x512xf32>
    %5 = arith.addf %2, %4 : vector<64x512xf32>
    %c0_5 = arith.constant 0 : index
    %c0_6 = arith.constant 0 : index
    %6 = vector.load %arg5[%c0_5, %c0_6] : memref<64x512xf32, #tpu.memory_space<vmem>>, vector<64x512xf32>
    tpu.vector_store %arg5[%c0_5, %c0_6], %5 {strides = array<i32>} : memref<64x512xf32, #tpu.memory_space<vmem>>, vector<64x512xf32>,
    return
  }
  func.func @transform_0(%arg0: i32, %arg1: i32) -> (i32, i32) {
    %c0_i32 = arith.constant 0 : i32
    %c0_i32_0 = arith.constant 0 : i32
    return %arg0, %c0_i32 : i32, i32
  }
  func.func @transform_1(%arg0: i32, %arg1: i32) -> (i32, i32) {
    %c0_i32 = arith.constant 0 : i32
    %c0_i32_0 = arith.constant 0 : i32
    return %c0_i32, %arg1 : i32, i32
  }
  func.func @transform_2(%arg0: i32, %arg1: i32) -> (i32, i32) {
    %c0_i32 = arith.constant 0 : i32
    %c0_i32_0 = arith.constant 0 : i32
    return %c0_i32, %arg1 : i32, i32
  }
  func.func @transform_3(%arg0: i32, %arg1: i32) -> (i32, i32) {
    %c0_i32 = arith.constant 0 : i32
    return %arg0, %arg1 : i32, i32
  }
}

</mosaic_0001>

<bundles_post_ra>
// kernel: tpu_custom_call.1
= control target key start
LH: loop header
LB: loop body
LE: loop exit
PB: predicated region body
PF: predicated region fallthrough
CT: control target
= control target key end

     0   :  { %8 = vsyncpa [#allocation3], 0  ;;  %s596_s0 = inlined_call_operand.hbm [shape: bf16[64,16], index: 0, kind: input, shape index: {}]   ;;  %s597_s1 = inlined_call_operand.hbm [shape: bf16[16,512], index: 1, kind: input, shape index: {}]   ;;  %s598_s2 = inlined_call_operand.hbm [shape: f32[1,512], index: 2, kind: input, shape index: {}]   ;;  %s599_s3 = inlined_call_operand.hbm [shape: f32[64,512], index: 3, kind: output, shape index: {}]  }
   0x1   :  { %9 = vsyncpa [#allocation6], 0 }
   0x2   :  { %10 = vsyncpa [#allocation4], 0  ;;  %s469_s12 = smov [#allocation5]   ;;  %s375_s16 = scalar_lea.hbm %s597_s1, 512 }
   0x3   :  { %s28_s13 = sshll.u32 %s469_s12, 4  ;;  %p376_p0 = scmp.ne.s32.totalorder %s597_s1, %s375_s16  ;;  %s29_s13 = int_to_ptr.vmem [resolvable:$true] %s28_s13 }
   0x4   :  { %p379_p1 = scmp.lt.u32.totalorder %s375_s16, %s597_s1 }
   0x6   :  { %p381_p2 = pnand %p379_p1, %p376_p0 }
   0x8   :  { %384 = shalt.err (!%p381_p2)
}
   0x9   :  { %s385_s21 = scalar_lea.vmem %s29_s13, 512  ;;  %p390_p4 = scmp.lt.s32.totalorder %s29_s13, %s29_s13 }
   0xa   :  { %p386_p3 = scmp.ne.s32.totalorder %s29_s13, %s385_s21  ;;  %p391_p5 = scmp.lt.s32.totalorder %s385_s21, %s385_s21 }
   0xc   :  { %p392_p6 = por %p391_p5, %p390_p4 }
   0xe   :  { %p393_p7 = pnand %p392_p6, %p386_p3 }
  0x10   :  { %396 = shalt.err (!%p393_p7)
}
  0x11   :  { %s470_s22 = smov 256   ;;  %s471_s23 = smov 16  }
  0x12   :  { %34 = dma.hbm_to_vmem [thread:$0]  %s597_s1, 512, %s29_s13, [#allocation6], %s470_s22, %s470_s22, %s471_s23  }
  0x13   :  { %s472_s26 = smov [#allocation2]   ;;  %s397_s30 = scalar_lea.hbm %s596_s0, 512 }
  0x14   :  { %s16_s27 = sshll.u32 %s472_s26, 4  ;;  %p398_p8 = scmp.ne.s32.totalorder %s596_s0, %s397_s30  ;;  %s17_s27 = int_to_ptr.vmem [resolvable:$true] %s16_s27 }
  0x15   :  { %p401_p9 = scmp.lt.u32.totalorder %s397_s30, %s596_s0 }
  0x17   :  { %p403_p10 = pnand %p401_p9, %p398_p8 }
  0x19   :  { %406 = shalt.err (!%p403_p10)
}
  0x1a   :  { %s407_s8 = scalar_lea.vmem %s17_s27, 512  ;;  %p412_p12 = scmp.lt.s32.totalorder %s17_s27, %s17_s27 }
  0x1b   :  { %p408_p11 = scmp.ne.s32.totalorder %s17_s27, %s407_s8  ;;  %p413_p13 = scmp.lt.s32.totalorder %s407_s8, %s407_s8 }
  0x1d   :  { %p414_p0 = por %p413_p13, %p412_p12 }
  0x1f   :  { %p415_p1 = pnand %p414_p0, %p408_p11 }
  0x21   :  { %418 = shalt.err (!%p415_p1)
}
  0x22   :  { %s473_s1 = smov 64   ;;  %s474_s9 = smov 4  }
  0x23   :  { %22 = dma.hbm_to_vmem [thread:$0]  %s596_s0, 512, %s17_s27, [#allocation3], %s473_s1, %s473_s1, %s474_s9  }
  0x24   :  { %s475_s12 = smov [#allocation7]   ;;  %s419_s16 = scalar_lea.hbm %s598_s2, 64 }
  0x25   :  { %s41_s13 = sshll.u32 %s475_s12, 4  ;;  %p420_p2 = scmp.ne.s32.totalorder %s598_s2, %s419_s16  ;;  %s42_s13 = int_to_ptr.vmem [resolvable:$true] %s41_s13 }
  0x26   :  { %p423_p3 = scmp.lt.u32.totalorder %s419_s16, %s598_s2 }
  0x28   :  { %p425_p4 = pnand %p423_p3, %p420_p2 }
  0x2a   :  { %428 = shalt.err (!%p425_p4)
}
  0x2b   :  { %s429_s21 = scalar_lea.vmem %s42_s13, 64  ;;  %p434_p6 = scmp.lt.s32.totalorder %s42_s13, %s42_s13 }
  0x2c   :  { %p430_p5 = scmp.ne.s32.totalorder %s42_s13, %s429_s21  ;;  %p435_p7 = scmp.lt.s32.totalorder %s429_s21, %s429_s21 }
  0x2e   :  { %p436_p8 = por %p435_p7, %p434_p6 }
  0x30   :  { %p437_p9 = pnand %p436_p8, %p430_p5 }
  0x32   :  { %440 = shalt.err (!%p437_p9)
}
  0x33   :  { %44 = dma.hbm_to_vmem [thread:$0]  %s598_s2, 64, %s42_s13, [#allocation6]  }
  0x34   :  { %463 = dma.done.wait [#allocation3], 512  }
  0x35   :  { %464 = vsyncadd [#allocation3], 4294966784 }
  0x36   :  { %465 = dma.done.wait [#allocation6], 576  }
  0x37   :  { %466 = vsyncadd [#allocation6], 4294966720  ;;  %v476_v0 = vmov 0   ;;  %v365_v1 = vld [vmem:[#allocation5 + $0x4] ss:$16 sps:$4 sm:$0xff]   ;;  %vm129_vm0 = vcmask 130048   ;;  %v69_v9 = vlaneseq }
  0x38   :  { %174 = vmatprep.mubr.bf16.mxu0 %v476_v0  ;;  %247 = vmatprep.mubr.bf16.mxu1 %v476_v0  ;;  %v367_v2 = vld [vmem:[#allocation5 + $0xc] ss:$16 sps:$4 sm:$0xff]   ;;  %v369_v3 = vld [vmem:[#allocation5] ss:$16 sps:$4 sm:$0xff]   ;;  %v370_v4 = vld [vmem:[#allocation5 + $0x8] ss:$16 sps:$4 sm:$0xff]  }
  0x39   :  { %142 = vmatprep.subr.bf16.mxu0 %v365_v1  ;;  %215 = vmatprep.subr.bf16.mxu1 %v367_v2  ;;  %v371_v5 = vld [vmem:[#allocation2] sm:$0xff]   ;;  %v372_v6 = vld [vmem:[#allocation2 + $0x8] sm:$0xff]   ;;  %v373_v7 = vld [vmem:[#allocation2 + $0x10] sm:$0xff]   ;;  %v70_v10 = vshrl.u32 %v69_v9, 7  ;;  %s477_s2 = smov [#allocation8]  }
  0x3a   :  { %143 = vmatpush1.bf16.msra.mxu0 %v369_v3  ;;  %216 = vmatpush1.bf16.msra.mxu1 %v370_v4  ;;  %v374_v8 = vld [vmem:[#allocation2 + $0x18] sm:$0xff]   ;;  %v67_v13 = vld [vmem:[#allocation7] sm:$0xf]  ;;  %s325_s23 = sshll.u32 %s477_s2, 4  ;;  %s326_s23 = int_to_ptr.vmem [resolvable:$true] %s325_s23 }
  0x3b   :  { %v71_v11 = vsub.s32 0, %v70_v10  ;;  %v79_v12 = vsub.s32 2, %v70_v10  ;;  %v75_v14 = vsub.s32 1, %v70_v10  ;;  %v83_v15 = vsub.s32 3, %v70_v10  ;;  %s441_s24 = scalar_lea.vmem %s326_s23, 4096  ;;  %p446_p11 = scmp.lt.s32.totalorder %s326_s23, %s326_s23 }
  0x3c   :  { %p442_p10 = scmp.ne.s32.totalorder %s326_s23, %s441_s24  ;;  %p447_p12 = scmp.lt.s32.totalorder %s441_s24, %s441_s24 }
  0x3d   :  { %346 = vmatmul.mubr.msk.bf16.vlgmr.msra.gmra.mrb[0].mxu0 %vm129_vm0, %v371_v5  ;;  %350 = vmatmul.mubr.msk.bf16.vlgmr.msra.gmra.mrb[0].mxu1 %vm129_vm0, %v371_v5  ;;  %v544_v16 = vrot.slane %v67_v13, %v71_v11  ;;  %v546_v17 = vrot.slane %v67_v13, %v79_v12  ;;  %v548_v18 = vrot.slane %v67_v13, %v75_v14 }
  0x3e   :  { %184 = vmatprep.mubr.bf16.mxu0 %v476_v0  ;;  %257 = vmatprep.mubr.bf16.mxu1 %v476_v0  ;;  %v550_v19 = vrot.slane %v67_v13, %v83_v15  ;;  %p448_p13 = por %p447_p12, %p446_p11 }
  0x40   :  { %p449_p0 = pnand %p448_p13, %p442_p10 }
  0x45   :  { %347 = vmatmul.mubr.msk.bf16.gmra.mrb[4].mxu0 %vm129_vm0, %v372_v6  ;;  %351 = vmatmul.mubr.msk.bf16.gmra.mrb[4].mxu1 %vm129_vm0, %v372_v6 }
  0x46   :  { %194 = vmatprep.mubr.bf16.mxu0 %v476_v0  ;;  %267 = vmatprep.mubr.bf16.mxu1 %v476_v0 }
  0x4d   :  { %348 = vmatmul.mubr.msk.bf16.gmra.mrb[8].mxu0 %vm129_vm0, %v373_v7  ;;  %352 = vmatmul.mubr.msk.bf16.gmra.mrb[8].mxu1 %vm129_vm0, %v373_v7 }
  0x4e   :  { %204 = vmatprep.mubr.bf16.mxu0 %v476_v0  ;;  %277 = vmatprep.mubr.bf16.mxu1 %v476_v0 }
  0x55   :  { %349 = vmatmul.mubr.msk.bf16.gmra.mrb[12].mxu0 %vm129_vm0, %v374_v8  ;;  %353 = vmatmul.mubr.msk.bf16.gmra.mrb[12].mxu1 %vm129_vm0, %v374_v8 }
 0x110   :  { %v176_v20 = vpop.f32.mrb[0].mxu0  ;;  %v249_v21 = vpop.f32.mrb[0].mxu1 }
 0x111   :  { %v177_v22 = vadd.f32 %v176_v20, %v544_v16  ;;  %v250_v23 = vadd.f32 %v249_v21, %v546_v17  ;;  %v178_v24 = vpop.f32.mrb[1].mxu0  ;;  %v251_v25 = vpop.f32.mrb[1].mxu1 }
 0x112   :  { %v179_v26 = vadd.f32 %v178_v24, %v548_v18  ;;  %v252_v27 = vadd.f32 %v251_v25, %v550_v19  ;;  %v180_v28 = vpop.f32.mrb[2].mxu0  ;;  %v253_v29 = vpop.f32.mrb[2].mxu1 }
 0x113   :  { %288 = vst [vmem:[#allocation8] sm:$0xff] %v177_v22  ;;  %290 = vst [vmem:[#allocation8 + $0x10] sm:$0xff] %v250_v23  ;;  %v181_v30 = vadd.f32 %v180_v28, %v544_v16  ;;  %v254_v31 = vadd.f32 %v253_v29, %v546_v17  ;;  %v182_v32 = vpop.f32.mrb[3].mxu0  ;;  %v255_v33 = vpop.f32.mrb[3].mxu1 }
 0x114   :  { %289 = vst [vmem:[#allocation8 + $0x8] sm:$0xff] %v179_v26  ;;  %291 = vst [vmem:[#allocation8 + $0x18] sm:$0xff] %v252_v27  ;;  %v183_v34 = vadd.f32 %v182_v32, %v548_v18  ;;  %v256_v35 = vadd.f32 %v255_v33, %v550_v19 }
 0x115   :  { %292 = vst [vmem:[#allocation8 + $0x20] sm:$0xff] %v181_v30  ;;  %294 = vst [vmem:[#allocation8 + $0x30] sm:$0xff] %v254_v31 }
 0x116   :  { %293 = vst [vmem:[#allocation8 + $0x28] sm:$0xff] %v183_v34  ;;  %295 = vst [vmem:[#allocation8 + $0x38] sm:$0xff] %v256_v35 }
 0x118   :  { %v186_v36 = vpop.f32.mrb[4].mxu0  ;;  %v259_v37 = vpop.f32.mrb[4].mxu1 }
 0x119   :  { %v187_v38 = vadd.f32 %v186_v36, %v544_v16  ;;  %v260_v39 = vadd.f32 %v259_v37, %v546_v17  ;;  %v188_v40 = vpop.f32.mrb[5].mxu0  ;;  %v261_v41 = vpop.f32.mrb[5].mxu1 }
 0x11a   :  { %v189_v42 = vadd.f32 %v188_v40, %v548_v18  ;;  %v262_v43 = vadd.f32 %v261_v41, %v550_v19  ;;  %v190_v44 = vpop.f32.mrb[6].mxu0  ;;  %v263_v45 = vpop.f32.mrb[6].mxu1 }
 0x11b   :  { %296 = vst [vmem:[#allocation8 + $0x40] sm:$0xff] %v187_v38  ;;  %298 = vst [vmem:[#allocation8 + $0x50] sm:$0xff] %v260_v39  ;;  %v191_v46 = vadd.f32 %v190_v44, %v544_v16  ;;  %v264_v47 = vadd.f32 %v263_v45, %v546_v17  ;;  %v192_v48 = vpop.f32.mrb[7].mxu0  ;;  %v265_v49 = vpop.f32.mrb[7].mxu1 }
 0x11c   :  { %297 = vst [vmem:[#allocation8 + $0x48] sm:$0xff] %v189_v42  ;;  %299 = vst [vmem:[#allocation8 + $0x58] sm:$0xff] %v262_v43  ;;  %v193_v50 = vadd.f32 %v192_v48, %v548_v18  ;;  %v266_v51 = vadd.f32 %v265_v49, %v550_v19 }
 0x11d   :  { %300 = vst [vmem:[#allocation8 + $0x60] sm:$0xff] %v191_v46  ;;  %302 = vst [vmem:[#allocation8 + $0x70] sm:$0xff] %v264_v47 }
 0x11e   :  { %301 = vst [vmem:[#allocation8 + $0x68] sm:$0xff] %v193_v50  ;;  %303 = vst [vmem:[#allocation8 + $0x78] sm:$0xff] %v266_v51 }
 0x120   :  { %v196_v52 = vpop.f32.mrb[8].mxu0  ;;  %v269_v53 = vpop.f32.mrb[8].mxu1 }
 0x121   :  { %v197_v54 = vadd.f32 %v196_v52, %v544_v16  ;;  %v270_v55 = vadd.f32 %v269_v53, %v546_v17  ;;  %v198_v56 = vpop.f32.mrb[9].mxu0  ;;  %v271_v57 = vpop.f32.mrb[9].mxu1 }
 0x122   :  { %v199_v58 = vadd.f32 %v198_v56, %v548_v18  ;;  %v272_v59 = vadd.f32 %v271_v57, %v550_v19  ;;  %v200_v60 = vpop.f32.mrb[10].mxu0  ;;  %v273_v61 = vpop.f32.mrb[10].mxu1 }
 0x123   :  { %304 = vst [vmem:[#allocation8 + $0x80] sm:$0xff] %v197_v54  ;;  %306 = vst [vmem:[#allocation8 + $0x90] sm:$0xff] %v270_v55  ;;  %v201_v62 = vadd.f32 %v200_v60, %v544_v16  ;;  %v274_v63 = vadd.f32 %v273_v61, %v546_v17  ;;  %v202_v0 = vpop.f32.mrb[11].mxu0  ;;  %v275_v1 = vpop.f32.mrb[11].mxu1 }
 0x124   :  { %305 = vst [vmem:[#allocation8 + $0x88] sm:$0xff] %v199_v58  ;;  %307 = vst [vmem:[#allocation8 + $0x98] sm:$0xff] %v272_v59  ;;  %v203_v2 = vadd.f32 %v202_v0, %v548_v18  ;;  %v276_v3 = vadd.f32 %v275_v1, %v550_v19 }
 0x125   :  { %308 = vst [vmem:[#allocation8 + $0xa0] sm:$0xff] %v201_v62  ;;  %310 = vst [vmem:[#allocation8 + $0xb0] sm:$0xff] %v274_v63 }
 0x126   :  { %309 = vst [vmem:[#allocation8 + $0xa8] sm:$0xff] %v203_v2  ;;  %311 = vst [vmem:[#allocation8 + $0xb8] sm:$0xff] %v276_v3 }
 0x128   :  { %v206_v4 = vpop.f32.mrb[12].mxu0  ;;  %v279_v5 = vpop.f32.mrb[12].mxu1 }
 0x129   :  { %v207_v6 = vadd.f32 %v206_v4, %v544_v16  ;;  %v280_v7 = vadd.f32 %v279_v5, %v546_v17  ;;  %v208_v8 = vpop.f32.mrb[13].mxu0  ;;  %v281_v9 = vpop.f32.mrb[13].mxu1 }
 0x12a   :  { %v209_v10 = vadd.f32 %v208_v8, %v548_v18  ;;  %v282_v11 = vadd.f32 %v281_v9, %v550_v19  ;;  %v210_v12 = vpop.f32.mrb[14].mxu0  ;;  %v283_v13 = vpop.f32.mrb[14].mxu1 }
 0x12b   :  { %312 = vst [vmem:[#allocation8 + $0xc0] sm:$0xff] %v207_v6  ;;  %314 = vst [vmem:[#allocation8 + $0xd0] sm:$0xff] %v280_v7  ;;  %v211_v14 = vadd.f32 %v210_v12, %v544_v16  ;;  %v284_v15 = vadd.f32 %v283_v13, %v546_v17  ;;  %v212_v20 = vpop.f32.mrb[15].mxu0  ;;  %v285_v21 = vpop.f32.mrb[15].mxu1 }
 0x12c   :  { %313 = vst [vmem:[#allocation8 + $0xc8] sm:$0xff] %v209_v10  ;;  %315 = vst [vmem:[#allocation8 + $0xd8] sm:$0xff] %v282_v11  ;;  %v213_v22 = vadd.f32 %v212_v20, %v548_v18  ;;  %v286_v23 = vadd.f32 %v285_v21, %v550_v19 }
 0x12d   :  { %316 = vst [vmem:[#allocation8 + $0xe0] sm:$0xff] %v211_v14  ;;  %318 = vst [vmem:[#allocation8 + $0xf0] sm:$0xff] %v284_v15 }
 0x12e   :  { %317 = vst [vmem:[#allocation8 + $0xe8] sm:$0xff] %v213_v22  ;;  %319 = vst [vmem:[#allocation8 + $0xf8] sm:$0xff] %v286_v23 }
 0x12f   :  { %452 = shalt.err (!%p449_p0)
}
 0x130   :  { %s453_s27 = scalar_lea.hbm %s599_s3, 4096 }
 0x131   :  { %p454_p1 = scmp.ne.s32.totalorder %s599_s3, %s453_s27  ;;  %p457_p2 = scmp.lt.u32.totalorder %s453_s27, %s599_s3 }
 0x133   :  { %p459_p3 = pnand %p457_p2, %p454_p1 }
 0x135   :  { %462 = shalt.err (!%p459_p3)
}
 0x136   :  { %s478_s5 = smov 512   ;;  %s479_s6 = smov 32  }
 0x137   :  { %331 = dma.vmem_to_hbm [thread:$0]  %s326_s23, 4096, %s599_s3, [#allocation4], %s478_s5, %s478_s5, %s479_s6  }
 0x138   :  { %467 = dma.done.wait [#allocation4], 4096  }
 0x139   :  { %468 = vsyncadd [#allocation4], 4294963200 }
 0x13a   :  { %335 = vsyncpa [#allocation3], 1 }
 0x13b   :  { %336 = vsyncpa [#allocation6], 1 }
 0x13c   :  { %337 = vsyncpa [#allocation4], 1 }

</bundles_post_ra>
